<compile_context>
chip_gen: v7x
topology: tpu7x:2x2x1
jax: 0.10.0
libtpu: 0.0.40
codegen_flags: <defaults>
</compile_context>

<pallas_src>
import math

import jax
import jax.numpy as jnp
from jax.experimental import pallas as pl
from jax.experimental.pallas import tpu as pltpu


def _conv_relu_argmax_kernel(w_ref, xcol_ref, v1_ref, v24_ref):
    """One batch element per grid step; everything fits easily in VMEM.

    w_ref:    (Cp, K)   f32  conv weight, rows >= Cout are zero padding
    xcol_ref: (K, Mp)   f32  im2col patches for this batch element (zero-padded lanes)
    v1_ref:   (Cp, Mp)  f32  relu(conv); lane axis = Mp (lane-dense stores)
    v24_ref:  (2, Mp)   i32  row 0 = argmax over channels, row 1 = argmax**2
    """
    acc = jnp.dot(w_ref[...], xcol_ref[...], preferred_element_type=jnp.float32)
    v1 = jnp.maximum(acc, 0.0)                                   # ReLU
    v1_ref[...] = v1

    cp = v1.shape[0]
    mx = jnp.max(v1, axis=0, keepdims=True)                      # (1, Mp)
    ch = jax.lax.broadcasted_iota(jnp.int32, v1.shape, 0)        # channel ids
    # first index achieving the max (torch.argmax / torch.max(dim)[1] semantics);
    # the zero padding row only ties when the max is 0, where a real channel
    # (index < Cout) also attains 0 and wins the min.
    idx = jnp.min(jnp.where(v1 == mx, ch, cp), axis=0, keepdims=True)
    v24_ref[...] = jnp.concatenate([idx, idx * idx], axis=0)     # single store


def conv_rel_forward(x_nchw, weight_oihw):
    """JAX/Pallas equivalent of Conv_ReL.forward up to the last valid op.

    x_nchw:      (N, Cin, H, W) float32
    weight_oihw: (Cout, Cin, KH, KW) float32  (torch Conv2d weight layout)
    returns (v1 [N,Cout,Ho,Wo], v2 [N,Ho,Wo] int32, v4 [N*Ho*Wo] int32)
    """
    N, Cin, H, W = x_nchw.shape
    Cout, _, KH, KW = weight_oihw.shape
    Ho, Wo = H - KH + 1, W - KW + 1        # 'valid' conv (padding=0)
    M = Ho * Wo
    K = Cin * KH * KW
    Mp = ((M + 127) // 128) * 128          # lane-dense spatial axis
    Cp = ((Cout + 7) // 8) * 8             # full sublane groups for channels

    # ---- glue: im2col directly in (N, K, M), K ordered (cin, kh, kw) ------
    patches = [x_nchw[:, :, kh:kh + Ho, kw:kw + Wo]
               for kh in range(KH) for kw in range(KW)]
    # (N, Cin, KH*KW, Ho, Wo) -> (N, K, M)
    xcol = jnp.stack(patches, axis=2).reshape(N, K, M)
    xcol = jnp.pad(xcol, ((0, 0), (0, 0), (0, Mp - M)))          # zero lanes
    # (Cout, Cin, KH, KW) -> (Cout, K) -> pad channels with zero rows
    wcol = jnp.pad(weight_oihw.reshape(Cout, K), ((0, Cp - Cout), (0, 0)))

    # ---- Pallas kernel: one batch element per grid step -------------------
    v1p, v24 = pl.pallas_call(
        _conv_relu_argmax_kernel,
        grid=(N,),
        in_specs=[
            pl.BlockSpec((Cp, K), lambda n: (0, 0)),             # weight (shared)
            pl.BlockSpec((None, K, Mp), lambda n: (n, 0, 0)),    # per-batch patches
        ],
        out_specs=[
            pl.BlockSpec((None, Cp, Mp), lambda n: (n, 0, 0)),
            pl.BlockSpec((None, 2, Mp), lambda n: (n, 0, 0)),
        ],
        out_shape=(
            jax.ShapeDtypeStruct((N, Cp, Mp), jnp.float32),
            jax.ShapeDtypeStruct((N, 2, Mp), jnp.int32),  # torch uses int64; int32 here
        ),
        compiler_params=pltpu.CompilerParams(
            dimension_semantics=("parallel",),
            allow_input_fusion=[True, True],
        ),
    )(wcol, xcol)

    # Free slices/reshapes only; no transpose needed.
    v1 = v1p[:, :Cout, :M].reshape(N, Cout, Ho, Wo)              # NCHW
    v2 = v24[:, 0, :M].reshape(N, Ho, Wo)
    v4 = v24[:, 1, :M].reshape(-1)
    return v1, v2, v4


if __name__ == "__main__":
    key = jax.random.PRNGKey(0)
    kx, kw = jax.random.split(key)

    # Input consistent with Conv2d(3, 31, (3,5)): NCHW, small spatial size.
    x = jax.random.normal(kx, (2, 3, 16, 16), dtype=jnp.float32)

    # Deterministic Conv2d weight init (kaiming-uniform-style bounds), no bias.
    fan_in = 3 * 3 * 5
    bound = 1.0 / math.sqrt(fan_in)
    weight = jax.random.uniform(kw, (31, 3, 3, 5), dtype=jnp.float32,
                                minval=-bound, maxval=bound)

    fwd = jax.jit(conv_rel_forward)
    v1, v2, v4 = fwd(x, weight)
    jax.block_until_ready((v1, v2, v4))

    # Sanity check against XLA's conv (relu(conv) + argmax + square).
    ref_conv = jax.lax.conv_general_dilated(
        x, weight, window_strides=(1, 1), padding="VALID",
        dimension_numbers=("NCHW", "OIHW", "NCHW"))
    ref_v1 = jnp.maximum(ref_conv, 0.0)
    ref_v2 = jnp.argmax(ref_v1, axis=1).astype(jnp.int32)
    ref_v4 = (ref_v2 * ref_v2).reshape(-1)
    assert jnp.allclose(v1, ref_v1, rtol=1e-4, atol=1e-4)
    assert jnp.array_equal(v2, ref_v2)
    assert jnp.array_equal(v4, ref_v4)

    print("KERNEL_OK")
</pallas_src>

<mosaic_0001>
module attributes {stable_mosaic.version = 11 : i64} {
  func.func @_conv_relu_argmax_kernel(%arg0: i32, %arg1: memref<32x45xf32, #tpu.memory_space<vmem>>, %arg2: memref<1x45x256xf32, #tpu.memory_space<vmem>>, %arg3: memref<1x32x256xf32, #tpu.memory_space<vmem>>, %arg4: memref<1x2x256xi32, #tpu.memory_space<vmem>>) attributes {dimension_semantics = [#tpu.dimension_semantics<parallel>], iteration_bounds = array<i64: 2>, scalar_prefetch = 0 : i64, scratch_operands = 0 : i64, tpu.core_type = #tpu.core_type<tc>, window_params = [{pipeline_mode = #tpu.pipeline_mode<synchronous>, transform_indices = @transform_0, window_bounds = array<i64: 32, 45>}, {transform_indices = @transform_1, window_bounds = array<i64: 1, 45, 256>}, {transform_indices = @transform_2, window_bounds = array<i64: 1, 32, 256>}, {transform_indices = @transform_3, window_bounds = array<i64: 1, 2, 256>}]} {
    %c0 = arith.constant 0 : index
    %c0_0 = arith.constant 0 : index
    %0 = vector.load %arg1[%c0, %c0_0] : memref<32x45xf32, #tpu.memory_space<vmem>>, vector<32x45xf32>
    %c0_1 = arith.constant 0 : index
    %c0_2 = arith.constant 0 : index
    %c0_3 = arith.constant 0 : index
    %1 = vector.load %arg2[%c0_1, %c0_2, %c0_3] : memref<1x45x256xf32, #tpu.memory_space<vmem>>, vector<1x45x256xf32>
    %2 = vector.shape_cast %1 : vector<1x45x256xf32> to vector<45x256xf32>
    %cst = arith.constant dense<0.000000e+00> : vector<32x256xf32>
    %3 = tpu.matmul %0, %2, %cst {dimension_numbers = #tpu.dot_dimension_numbers<[1], [0], [0], [1], [0, 0, 1, 1], [], []>} : vector<32x45xf32>, vector<45x256xf32>, vector<32x256xf32> -> vector<32x256xf32>
    %cst_4 = arith.constant 0.000000e+00 : f32
    %4 = vector.broadcast %cst_4 : f32 to vector<32x256xf32>
    %5 = arith.maximumf %3, %4 : vector<32x256xf32>
    %c0_5 = arith.constant 0 : index
    %c0_6 = arith.constant 0 : index
    %c0_7 = arith.constant 0 : index
    %6 = vector.load %arg3[%c0_5, %c0_6, %c0_7] : memref<1x32x256xf32, #tpu.memory_space<vmem>>, vector<1x32x256xf32>
    %7 = vector.shape_cast %6 : vector<1x32x256xf32> to vector<32x256xf32>
    %8 = vector.shape_cast %5 : vector<32x256xf32> to vector<1x32x256xf32>
    tpu.vector_store %arg3[%c0_5, %c0_6, %c0_7], %8 {strides = array<i32>} : memref<1x32x256xf32, #tpu.memory_space<vmem>>, vector<1x32x256xf32>,
    %cst_8 = arith.constant dense<0xFF800000> : vector<256xf32>
    %9 = vector.multi_reduction <maximumf>, %5, %cst_8 [0] : vector<32x256xf32> to vector<256xf32>
    %10 = vector.shape_cast %9 : vector<256xf32> to vector<1x256xf32>
    %11 = tpu.iota {dimensions = array<i32: 0>} : vector<32x256xi32>
    %12 = vector.broadcast %10 : vector<1x256xf32> to vector<32x256xf32>
    %13 = arith.cmpf oeq, %5, %12 : vector<32x256xf32>
    %c32_i32 = arith.constant 32 : i32
    %14 = vector.broadcast %c32_i32 : i32 to vector<32x256xi32>
    %15 = arith.select %13, %11, %14 : vector<32x256xi1>, vector<32x256xi32>
    %cst_9 = arith.constant dense<2147483647> : vector<256xi32>
    %16 = vector.multi_reduction <minsi>, %15, %cst_9 [0] : vector<32x256xi32> to vector<256xi32>
    %17 = vector.shape_cast %16 : vector<256xi32> to vector<1x256xi32>
    %18 = arith.muli %17, %17 : vector<1x256xi32>
    %19 = tpu.concatenate %17, %18 in 0 : vector<1x256xi32>, vector<1x256xi32> -> vector<2x256xi32>
    %c0_10 = arith.constant 0 : index
    %c0_11 = arith.constant 0 : index
    %c0_12 = arith.constant 0 : index
    %20 = vector.load %arg4[%c0_10, %c0_11, %c0_12] : memref<1x2x256xi32, #tpu.memory_space<vmem>>, vector<1x2x256xi32>
    %21 = vector.shape_cast %20 : vector<1x2x256xi32> to vector<2x256xi32>
    %22 = vector.shape_cast %19 : vector<2x256xi32> to vector<1x2x256xi32>
    tpu.vector_store %arg4[%c0_10, %c0_11, %c0_12], %22 {strides = array<i32>} : memref<1x2x256xi32, #tpu.memory_space<vmem>>, vector<1x2x256xi32>,
    return
  }
  func.func @transform_0(%arg0: i32) -> (i32, i32) {
    %c0_i32 = arith.constant 0 : i32
    %c0_i32_0 = arith.constant 0 : i32
    %c0_i32_1 = arith.constant 0 : i32
    return %c0_i32, %c0_i32_0 : i32, i32
  }
  func.func @transform_1(%arg0: i32) -> (i32, i32, i32) {
    %c0_i32 = arith.constant 0 : i32
    %c0_i32_0 = arith.constant 0 : i32
    %c0_i32_1 = arith.constant 0 : i32
    return %arg0, %c0_i32, %c0_i32_0 : i32, i32, i32
  }
  func.func @transform_2(%arg0: i32) -> (i32, i32, i32) {
    %c0_i32 = arith.constant 0 : i32
    %c0_i32_0 = arith.constant 0 : i32
    %c0_i32_1 = arith.constant 0 : i32
    return %arg0, %c0_i32, %c0_i32_0 : i32, i32, i32
  }
  func.func @transform_3(%arg0: i32) -> (i32, i32, i32) {
    %c0_i32 = arith.constant 0 : i32
    %c0_i32_0 = arith.constant 0 : i32
    %c0_i32_1 = arith.constant 0 : i32
    return %arg0, %c0_i32, %c0_i32_0 : i32, i32, i32
  }
}

</mosaic_0001>

<bundles_post_ra>
// kernel: squeeze.2
= control target key start
LH: loop header
LB: loop body
LE: loop exit
PB: predicated region body
PF: predicated region fallthrough
CT: control target
= control target key end

     0   :  { %s130_s10 = smov 116   ;;  %vm91_vm0 = vcmask 982016   ;;  %vm11_vm1 = vcmask 97280   ;;  %s131_s11 = smov 104   ;;  %vm95_vm2 = vcmask 64512   ;;  %vm98_vm3 = vcmask 97344   ;;  %s216_s0 = inlined_call_operand.vmem [shape: s32[2,168], index: 0, kind: input, shape index: {}]   ;;  %s217_s1 = inlined_call_operand.vmem [shape: s32[2,14,12], index: 1, kind: output, shape index: {}]  }
   0x1   :  { %v101_v0 = vld [vmem:[%s216_s0 + $0x2] sm:$0x3]  ;;  %v8_v1 = vld [vmem:[%s216_s0] sm:$0x3]  ;;  %s129_s0 = smov 124   ;;  %s132_s12 = smov 112  }
   0x2   :  { %7 = vst [vmem:[#allocation0 + $0x8] sm:$0x3] %v101_v0  ;;  %9 = vst [vmem:[#allocation0] sm:$0x3] %v8_v1  ;;  %s133_s15 = smov 8   ;;  %s134_s16 = smov 100  }
   0x3   :  { %s135_s17 = smov 92   ;;  %s136_s18 = smov 80  }
   0x4   :  { %s137_s19 = smov 68   ;;  %s138_s20 = smov 56  }
   0x5   :  { %s139_s21 = smov 44   ;;  %s140_s22 = smov 32  }
   0x6   :  { %s141_s23 = smov 20  }
   0x9   :  { %v14_v2 = vld [vmem:[#allocation0 + $0x8] sm:$0x3]   ;;  %v20_v3 = vld [vmem:[#allocation0] sm:$0x3]  }
   0xa   :  { %15 = vrot.lane.b32.xlu0 %v14_v2, %s129_s0  ;;  %21 = vrot.lane.b32.xlu1 %v20_v3, %s130_s10  ;;  %v33_v4 = vld [vmem:[#allocation0] sm:$0x3]   ;;  %v27_v5 = vld [vmem:[#allocation0 + $0x8] sm:$0x3]  }
   0xb   :  { %v88_v6 = vld [vmem:[#allocation0] sm:$0x3]   ;;  %v90_v7 = vld [vmem:[#allocation0 + $0x8] sm:$0x3]  }
   0xc   :  { %v10_v8 = vld [vmem:[#allocation0] sm:$0x3]   ;;  %v92_v9 = vsel %vm91_vm0, %v90_v7, %v88_v6  ;;  %v40_v10 = vld [vmem:[#allocation0 + $0x8] sm:$0x3]  }
   0xd   :  { %12 = vst.msk [vmem:[%s217_s1] ss:$16 sm:$0x3] %vm11_vm1, %v10_v8   ;;  %v46_v11 = vld [vmem:[#allocation0] sm:$0x3]  }
   0xe   :  { %34 = vrot.lane.b32.xlu0 %v33_v4, %s131_s11  ;;  %28 = vrot.lane.b32.xlu1 %v27_v5, %s132_s12  ;;  %v52_v12 = vld [vmem:[#allocation0] sm:$0x3]  }
   0xf   :  { %v58_v13 = vld [vmem:[#allocation0] sm:$0x3]  }
  0x10   :  { %v64_v14 = vld [vmem:[#allocation0] sm:$0x3]  }
  0x11   :  { %v70_v15 = vld [vmem:[#allocation0] sm:$0x3]  }
  0x12   :  { %93 = vrot.lane.b32.xlu0 %v92_v9, %s133_s15  ;;  %41 = vrot.lane.b32.xlu1 %v40_v10, %s134_s16  ;;  %v76_v16 = vld [vmem:[#allocation0] sm:$0x3]  }
  0x13   :  { %v82_v17 = vld [vmem:[#allocation0] sm:$0x3]  }
  0x16   :  { %47 = vrot.lane.b32.xlu0 %v46_v11, %s135_s17  ;;  %53 = vrot.lane.b32.xlu1 %v52_v12, %s136_s18 }
  0x1a   :  { %59 = vrot.lane.b32.xlu0 %v58_v13, %s137_s19  ;;  %65 = vrot.lane.b32.xlu1 %v64_v14, %s138_s20 }
  0x1e   :  { %71 = vrot.lane.b32.xlu0 %v70_v15, %s139_s21  ;;  %77 = vrot.lane.b32.xlu1 %v76_v16, %s140_s22 }
  0x22   :  { %83 = vrot.lane.b32.xlu0 %v82_v17, %s141_s23 }
  0x7c   :  { %v16_v18 = vpop.permute.xlu0 %15   ;;  %v22_v19 = vpop.permute.xlu1 %21  }
  0x7d   :  { %102 = vst.msk [vmem:[%s217_s1 + $0xb] ss:$16 sm:$0x3] %vm11_vm1, %v16_v18   ;;  %103 = vst.msk [vmem:[%s217_s1 + $0x1] ss:$16 sm:$0x3] %vm11_vm1, %v22_v19  }
  0x80   :  { %v35_v20 = vpop.permute.xlu0 %34   ;;  %v29_v21 = vpop.permute.xlu1 %28  }
  0x81   :  { %105 = vst.msk [vmem:[%s217_s1 + $0x2] ss:$16 sm:$0x3] %vm11_vm1, %v35_v20   ;;  %104 = vst.msk [vmem:[%s217_s1 + $0xc] ss:$16 sm:$0x3] %vm11_vm1, %v29_v21  }
  0x84   :  { %v94_v22 = vpop.permute.xlu0 %93   ;;  %v42_v23 = vpop.permute.xlu1 %41  }
  0x85   :  { %114 = vst.msk [vmem:[%s217_s1 + $0xa] ss:$16 sm:$0x3] %vm95_vm2, %v94_v22  }
  0x86   :  { %106 = vst.msk [vmem:[%s217_s1 + $0xd] ss:$16 sm:$0x3] %vm11_vm1, %v42_v23  }
  0x87   :  { %115 = vst.msk [vmem:[%s217_s1 + $0xa] ss:$16 sm:$0x3] %vm98_vm3, %v94_v22  }
  0x88   :  { %v48_v24 = vpop.permute.xlu0 %47   ;;  %v54_v25 = vpop.permute.xlu1 %53  }
  0x89   :  { %107 = vst.msk [vmem:[%s217_s1 + $0x3] ss:$16 sm:$0x3] %vm11_vm1, %v48_v24   ;;  %108 = vst.msk [vmem:[%s217_s1 + $0x4] ss:$16 sm:$0x3] %vm11_vm1, %v54_v25  }
  0x8c   :  { %v60_v26 = vpop.permute.xlu0 %59   ;;  %v66_v27 = vpop.permute.xlu1 %65  }
  0x8d   :  { %109 = vst.msk [vmem:[%s217_s1 + $0x5] ss:$16 sm:$0x3] %vm11_vm1, %v60_v26   ;;  %110 = vst.msk [vmem:[%s217_s1 + $0x6] ss:$16 sm:$0x3] %vm11_vm1, %v66_v27  }
  0x90   :  { %v72_v28 = vpop.permute.xlu0 %71   ;;  %v78_v29 = vpop.permute.xlu1 %77  }
  0x91   :  { %111 = vst.msk [vmem:[%s217_s1 + $0x7] ss:$16 sm:$0x3] %vm11_vm1, %v72_v28   ;;  %112 = vst.msk [vmem:[%s217_s1 + $0x8] ss:$16 sm:$0x3] %vm11_vm1, %v78_v29  }
  0x94   :  { %v84_v30 = vpop.permute.xlu0 %83  }
  0x95   :  { %113 = vst.msk [vmem:[%s217_s1 + $0x9] ss:$16 sm:$0x3] %vm11_vm1, %v84_v30  }

// kernel: squeeze.3
= control target key start
LH: loop header
LB: loop body
LE: loop exit
PB: predicated region body
PF: predicated region fallthrough
CT: control target
= control target key end

     0   :  { %s112_s0 = inlined_call_operand.vmem [shape: s32[2,168], index: 0, kind: input, shape index: {}]   ;;  %s113_s1 = inlined_call_operand.hbm [shape: s32[336], index: 1, kind: output, shape index: {}]  }
   0x1   :  { %v55_v0 = vld [vmem:[%s112_s0 + $0x2] sm:$0x3]  ;;  %v9_v1 = vld [vmem:[%s112_s0] sm:$0x3] }
   0x2   :  { %8 = vst [vmem:[#allocation3 + $0x8] sm:$0x3] %v55_v0  ;;  %10 = vst [vmem:[#allocation3] sm:$0x3] %v9_v1 }
   0x3   :  { %2 = vsyncpa [#allocation1], 0  ;;  %vm22_vm0 = vcmask 719872   ;;  %vm13_vm1 = vcmask 326656   ;;  %s82_s0 = smov 40   ;;  %vm29_vm2 = vcmask 654656  }
   0x4   :  { %vm36_vm3 = vcmask 1047872   ;;  %s83_s10 = smov [#allocation0]  }
   0x5   :  { %s49_s11 = sshll.u32 %s83_s10, 4  ;;  %s50_s11 = int_to_ptr.vmem [resolvable:$true] %s49_s11 }
   0x6   :  { %s58_s12 = scalar_lea.vmem %s50_s11, 64  ;;  %p63_p1 = scmp.lt.s32.totalorder %s50_s11, %s50_s11 }
   0x7   :  { %p59_p0 = scmp.ne.s32.totalorder %s50_s11, %s58_s12  ;;  %p64_p2 = scmp.lt.s32.totalorder %s58_s12, %s58_s12 }
   0x9   :  { %v19_v2 = vld [vmem:[#allocation3 + $0x1] sm:$0x1]   ;;  %v21_v3 = vld [vmem:[#allocation3 + $0x9] sm:$0x1]   ;;  %v12_v5 = vld [vmem:[#allocation3 + $0x8] sm:$0x1]   ;;  %p65_p3 = por %p64_p2, %p63_p1 }
   0xa   :  { %v23_v4 = vsel %vm22_vm0, %v21_v3, %v19_v2  ;;  %v16_v6 = vld [vmem:[#allocation3] sm:$0x1]   ;;  %15 = vst.msk [vmem:[#allocation2 + $0x1] sm:$0x1] %vm13_vm1, %v12_v5   ;;  %v33_v7 = vld [vmem:[#allocation3 + $0x1] sm:$0x1]  }
   0xb   :  { %24 = vrot.lane.b32.xlu0 %v23_v4, %s82_s0  ;;  %17 = vst [vmem:[#allocation2] sm:$0x1] %v16_v6   ;;  %p66_p4 = pnand %p65_p3, %p59_p0 }
   0xf   :  { %34 = vrot.lane.b32.xlu0 %v33_v7, %s82_s0 }
  0x7d   :  { %v25_v8 = vpop.permute.xlu0 %24  }
  0x7e   :  { %28 = vst.msk [vmem:[#allocation2 + $0x2] sm:$0x1] %vm13_vm1, %v25_v8  }
  0x7f   :  { %31 = vst.msk [vmem:[#allocation2 + $0x2] sm:$0x1] %vm29_vm2, %v25_v8  }
  0x81   :  { %v35_v9 = vpop.permute.xlu0 %34  }
  0x82   :  { %38 = vst.msk [vmem:[#allocation2 + $0x1] sm:$0x1] %vm36_vm3, %v35_v9  }
  0x89   :  { %v42_v10 = vld [vmem:[#allocation2] sm:$0xf] }
  0x8a   :  { %44 = vst [vmem:[#allocation0] sm:$0xf] %v42_v10 }
  0x8b   :  { %69 = shalt.err (!%p66_p4)
}
  0x8c   :  { %s70_s15 = scalar_lea.hbm %s113_s1, 64 }
  0x8d   :  { %p71_p5 = scmp.ne.s32.totalorder %s113_s1, %s70_s15  ;;  %p74_p6 = scmp.lt.u32.totalorder %s70_s15, %s113_s1 }
  0x8f   :  { %p76_p7 = pnand %p74_p6, %p71_p5 }
  0x91   :  { %79 = shalt.err (!%p76_p7)
}
  0x92   :  { %52 = dma.vmem_to_hbm [thread:$0]  %s50_s11, 64, %s113_s1, [#allocation1]  }
  0x93   :  { %80 = dma.done.wait [#allocation1], 64  }
  0x94   :  { %81 = vsyncadd [#allocation1], 4294967232 }
  0x95   :  { %54 = vsyncpa [#allocation1], 1 }

// kernel: conv_rel_forward.2
= control target key start
LH: loop header
LB: loop body
LE: loop exit
PB: predicated region body
PF: predicated region fallthrough
CT: control target
= control target key end

     0   :  { %s841_s17 = smov 0   ;;  %s928_s0 = inlined_call_operand.vmem [shape: f32[2,45,168], index: 0, kind: input, shape index: {}]   ;;  %s929_s1 = inlined_call_operand.<no memory space> [shape: f32[], index: 1, kind: input, shape index: {}]   ;;  %s930_s2 = inlined_call_operand.vmem [shape: f32[31,45], index: 2, kind: input, shape index: {}]   ;;  %s931_s3 = inlined_call_operand.vmem [shape: f32[2,32,256], index: 3, kind: output, shape index: {0}]   ;;  %s932_s4 = inlined_call_operand.vmem [shape: s32[2,2,256], index: 4, kind: output, shape index: {1}]  }
   0x1   :  { %v839_v0 = vstv %s929_s1 }
   0x2 LB: > { %s735_s18 = sadd.s32 4294967295, %s807_s17   ;;  %p739_p0 = scmp.ge.s32.totalorder %s807_s17, 1  ;;  %s807_s17 = sphi %s841_s17, %s17_s17  }
   0x3   : > { %p143_p1 = scmp.lt.s32.totalorder %s807_s17, 3 }
   0x5   : > { %p144_p2 = pnand %p739_p0, %p143_p1 }
   0x7   : > { %147 = sbr.rel (%p144_p2) target bundleno = 302 (0x12e), region = 28 }
   0xe   : > { %p172_p3 = scmp.lt.s32.totalorder %s735_s18, 1  ;;  %v193_v1 = vlaneseq  ;;  %v809_v2 = vmov 0.0   ;;  %vm452_vm2 = vcmask 1044480   ;;  %vm810_vm3 = vmmov 1   ;;  %v187_v36 = vld [vmem:[%s930_s2] sm:$0xff]  ;;  %v746_v37 = vld [vmem:[%s930_s2 + $0x10] sm:$0xff] }
   0xf   : > { %523 = vmatprep.mubr.f32.mxu0 %v809_v2  ;;  %535 = vmatprep.mubr.f32.mxu1 %v809_v2  ;;  %vm779_vm4 = vmpackc.low %vm452_vm2, %vm810_vm3  ;;  %v747_v38 = vld [vmem:[%s930_s2 + $0x18] sm:$0xff]  ;;  %vm439_vm7 = vcmask 367616   ;;  %v745_v41 = vld [vmem:[%s930_s2 + $0x8] sm:$0xff] }
  0x10   : > { %s934_s18 = smov (!%p172_p3, %s735_s18), 1  ;;  %v853_v3 = vand.u32 127, %v193_v1  ;;  %v855_v4 = vshrl.u32 %v193_v1, 7 }
  0x11   : > { %s790_s1 = smul.u32 96, %s934_s18  ;;  %s768_s30 = sshll.u32 %s934_s18, 6 }
  0x12   : > { %v267_v5 = vadd.s32 128, %v853_v3  ;;  %v397_v6 = vadd.s32 40, %v855_v4  ;;  %v880_v31 = vadd.s32 24, %v855_v4  ;;  %vm196_vm5 = vcmp.lt.s32.totalorder %v853_v3, 45  ;;  %s181_s7 = scalar_lea.vmem %s931_s3, %s768_s30  ;;  %s769_s8 = sshll.u32 %s934_s18, 2 }
  0x13   : > { %s176_s21 = scalar_lea.vmem %s928_s0, %s790_s1  ;;  %v197_v39 = vsel %vm196_vm5, %v187_v36, %v839_v0  ;;  %v226_v40 = vsel %vm196_vm5, %v746_v37, %v839_v0  ;;  %v211_v43 = vsel %vm196_vm5, %v745_v41, %v839_v0  ;;  %s186_s11 = scalar_lea.vmem %s932_s4, %s769_s8 }
  0x14   : > { %vm268_vm0 = vcmp.lt.s32.totalorder %v267_v5, 168  ;;  %v748_v7 = vld [vmem:[%s176_s21 + $0x8] sm:$0xff]  ;;  %v750_v8 = vld [vmem:[%s176_s21 + $0x18] sm:$0xff]  ;;  %v245_v9 = vld [vmem:[%s176_s21] sm:$0xff]  ;;  %vm398_vm1 = vcmp.lt.s32.totalorder %v397_v6, 45  ;;  %vm235_vm6 = vcmp.lt.s32.totalorder %v880_v31, 31 }
  0x15   : > { %v269_v10 = vsel %vm268_vm0, %v748_v7, %v839_v0  ;;  %v299_v11 = vsel %vm268_vm0, %v750_v8, %v839_v0  ;;  %v749_v12 = vld [vmem:[%s176_s21 + $0x10] sm:$0xff]  ;;  %v752_v13 = vld [vmem:[%s176_s21 + $0x28] sm:$0xff]  ;;  %v754_v14 = vld [vmem:[%s176_s21 + $0x38] sm:$0xff]  ;;  %v236_v42 = vsel %vm235_vm6, %v747_v38, %v839_v0 }
  0x16   : > { %v770_v15 = vpack.c.bf16 %v299_v11, %v269_v10  ;;  %v772_v16 = vpack.c.bf16 %v749_v12, %v245_v9  ;;  %v329_v17 = vsel %vm268_vm0, %v752_v13, %v839_v0  ;;  %v359_v18 = vsel %vm268_vm0, %v754_v14, %v839_v0  ;;  %v751_v19 = vld [vmem:[%s176_s21 + $0x20] sm:$0xff]  ;;  %v753_v20 = vld [vmem:[%s176_s21 + $0x30] sm:$0xff]  ;;  %v756_v21 = vld [vmem:[%s176_s21 + $0x48] sm:$0xff] }
  0x17   : > { %v774_v22 = vpack.c.bf16 %v359_v18, %v329_v17  ;;  %v389_v23 = vsel %vm268_vm0, %v756_v21, %v839_v0  ;;  %v758_v24 = vld [vmem:[%s176_s21 + $0x58] sm:$0xff]  ;;  %v755_v25 = vld [vmem:[%s176_s21 + $0x40] sm:$0xff]  ;;  %v757_v26 = vld [vmem:[%s176_s21 + $0x50] sm:$0xff]  ;;  %v776_v29 = vpack.c.bf16 %v753_v20, %v751_v19  ;;  %v241_v44 = vsel %vm196_vm5, %v236_v42, %v839_v0 }
  0x18   : > { %771 = vmatprep.subr.bf16.mxu0 %v770_v15  ;;  %784 = vmatprep.subr.bf16.mxu1 %v770_v15  ;;  %v414_v27 = vsel %vm398_vm1, %v758_v24, %v839_v0  ;;  %v399_v28 = vsel %vm398_vm1, %v757_v26, %v839_v0  ;;  %v584_v14 = vadd.s32 8, %v855_v4  ;;  %v585_v15 = vadd.s32 16, %v855_v4 }
  0x19   : > { %773 = vmatpush1.bf16.msra.mxu0 %v772_v16  ;;  %787 = vmatpush1.bf16.msra.mxu1 %v772_v16  ;;  %v419_v30 = vsel %vm268_vm0, %v414_v27, %v839_v0  ;;  %407 = vst [vmem:[#allocation13 + $0x50] sm:$0xff] %v399_v28 }
  0x1a   : > { %775 = vmatprep.subr.bf16.mxu0 %v774_v22  ;;  %785 = vmatprep.subr.bf16.mxu1 %v774_v22  ;;  %422 = vst [vmem:[#allocation13 + $0x58] sm:$0xff] %v419_v30 }
  0x1d   : > { %777 = vmatpush1.bf16.msra.mxu0 %v776_v29  ;;  %788 = vmatpush1.bf16.msra.mxu1 %v776_v29 }
  0x20   : > { %v437_v32 = vld [vmem:[#allocation13 + $0x50] sm:$0x1f] }
  0x21   : > { %v438_v33 = vld [vmem:[#allocation13 + $0x58] sm:$0x1f]  ;;  %v781_v34 = vpack.c.bf16 %v437_v32, %v755_v25 }
  0x22   : > { %v778_v35 = vpack.c.bf16 %v438_v33, %v389_v23 }
  0x24   : > { %780 = vmatprep.subr.msk.bf16.mxu0 %vm779_vm4, %v778_v35  ;;  %786 = vmatprep.subr.msk.bf16.mxu1 %vm779_vm4, %v778_v35 }
  0x25   : > { %783 = vmatpush1.bf16.msk.msra.mxu0 %vm779_vm4, %v781_v34  ;;  %789 = vmatpush1.bf16.msk.msra.mxu1 %vm779_vm4, %v781_v34 }
  0x28   : > { %761 = vmatmul.mubr.msk.f32.vlgmr.msra.gmra.mrb[0].mxu0 %vm439_vm7, %v197_v39  ;;  %763 = vmatmul.mubr.msk.f32.vlgmr.msra.gmra.mrb[0].mxu1 %vm439_vm7, %v226_v40 }
  0x29   : > { %529 = vmatprep.mubr.f32.mxu0 %v809_v2  ;;  %541 = vmatprep.mubr.f32.mxu1 %v809_v2 }
  0x2c   : > { %762 = vmatmul.mubr.msk.f32.gmra.mrb[2].mxu0 %vm439_vm7, %v211_v43  ;;  %764 = vmatmul.mubr.msk.f32.gmra.mrb[2].mxu1 %vm439_vm7, %v241_v44 }
  0xfb   : > { %v525_v45 = vpop.f32.mrb[0].mxu0  ;;  %v537_v46 = vpop.f32.mrb[0].mxu1 }
  0xfc   : > { %v548_v47 = vmax.f32 %v525_v45, 0.0  ;;  %v552_v48 = vmax.f32 %v537_v46, 0.0  ;;  %v527_v49 = vpop.f32.mrb[1].mxu0  ;;  %v539_v50 = vpop.f32.mrb[1].mxu1 }
  0xfd   : > { %v549_v51 = vmax.f32 %v527_v49, 0.0  ;;  %v553_v52 = vmax.f32 %v539_v50, 0.0 }
  0xfe   : > { %556 = vst [vmem:[%s181_s7] sm:$0xff] %v548_v47  ;;  %560 = vst [vmem:[%s181_s7 + $0x20] sm:$0xff] %v552_v48  ;;  %v564_v53 = vmax.f32 %v548_v47, %v552_v48 }
  0xff   : > { %557 = vst [vmem:[%s181_s7 + $0x8] sm:$0xff] %v549_v51  ;;  %561 = vst [vmem:[%s181_s7 + $0x28] sm:$0xff] %v553_v52  ;;  %v573_v54 = vmax.f32 %v549_v51, %v553_v52  ;;  %v531_v55 = vpop.f32.mrb[2].mxu0  ;;  %v543_v56 = vpop.f32.mrb[2].mxu1 }
 0x100   : > { %v550_v57 = vmax.f32 %v531_v55, 0.0  ;;  %v554_v58 = vmax.f32 %v543_v56, 0.0  ;;  %v533_v59 = vpop.f32.mrb[3].mxu0  ;;  %v545_v60 = vpop.f32.mrb[3].mxu1 }
 0x101   : > { %v551_v61 = vmax.f32 %v533_v59, 0.0  ;;  %v555_v62 = vmax.f32 %v545_v60, 0.0 }
 0x102   : > { %558 = vst [vmem:[%s181_s7 + $0x10] sm:$0xff] %v550_v57  ;;  %562 = vst [vmem:[%s181_s7 + $0x30] sm:$0xff] %v554_v58  ;;  %v565_v63 = vmax.f32 %v550_v57, %v554_v58 }
 0x103   : > { %559 = vst [vmem:[%s181_s7 + $0x18] sm:$0xff] %v551_v61  ;;  %563 = vst [vmem:[%s181_s7 + $0x38] sm:$0xff] %v555_v62  ;;  %v574_v1 = vmax.f32 %v551_v61, %v555_v62 }
 0x104   : > { %v566_v2 = vmax.f32 %v564_v53, %v565_v63 }
 0x105   : > { %v575_v3 = vmax.f32 %v573_v54, %v574_v1 }
 0x106   : > { %v567_v5 = vrot.slane %v566_v2, 4 }
 0x107   : > { %v576_v6 = vrot.slane %v575_v3, 4 }
 0x108   : > { %v568_v7 = vmax.f32 %v566_v2, %v567_v5 }
 0x109   : > { %v577_v8 = vmax.f32 %v575_v3, %v576_v6 }
 0x10a   : > { %v569_v9 = vrot.slane %v568_v7, 2 }
 0x10b   : > { %v578_v10 = vrot.slane %v577_v8, 2 }
 0x10c   : > { %v570_v11 = vmax.f32 %v568_v7, %v569_v9 }
 0x10d   : > { %v579_v12 = vmax.f32 %v577_v8, %v578_v10 }
 0x10e   : > { %v571_v13 = vrot.slane %v570_v11, 1 }
 0x10f   : > { %v580_v16 = vrot.slane %v579_v12, 1 }
 0x110   : > { %v572_v17 = vmax.f32 %v570_v11, %v571_v13 }
 0x111   : > { %v581_v18 = vmax.f32 %v579_v12, %v580_v16 }
 0x112   : > { %vm587_vm8 = vcmp.eq.f32.partialorder %v548_v47, %v572_v17  ;;  %vm589_vm9 = vcmp.eq.f32.partialorder %v550_v57, %v572_v17  ;;  %vm591_vm10 = vcmp.eq.f32.partialorder %v552_v48, %v572_v17  ;;  %vm593_vm11 = vcmp.eq.f32.partialorder %v554_v58, %v572_v17 }
 0x113   : > { %v595_v19 = vsel %vm587_vm8, %v855_v4, 32  ;;  %v597_v20 = vsel %vm589_vm9, %v584_v14, 32  ;;  %v599_v21 = vsel %vm591_vm10, %v585_v15, 32  ;;  %v601_v22 = vsel %vm593_vm11, %v880_v31, 32 }
 0x114   : > { %vm603_vm12 = vcmp.lt.s32.totalorder %v595_v19, %v599_v21  ;;  %vm605_vm13 = vcmp.lt.s32.totalorder %v597_v20, %v601_v22  ;;  %vm588_vm14 = vcmp.eq.f32.partialorder %v549_v51, %v581_v18  ;;  %vm590_vm15 = vcmp.eq.f32.partialorder %v551_v61, %v581_v18 }
 0x115   : > { %v604_v23 = vsel %vm603_vm12, %v595_v19, %v599_v21  ;;  %v606_v24 = vsel %vm605_vm13, %v597_v20, %v601_v22  ;;  %vm592_vm0 = vcmp.eq.f32.partialorder %v553_v52, %v581_v18  ;;  %vm594_vm1 = vcmp.eq.f32.partialorder %v555_v62, %v581_v18 }
 0x116   : > { %vm607_vm2 = vcmp.lt.s32.totalorder %v604_v23, %v606_v24  ;;  %v596_v25 = vsel %vm588_vm14, %v855_v4, 32  ;;  %v598_v26 = vsel %vm590_vm15, %v584_v14, 32  ;;  %v600_v27 = vsel %vm592_vm0, %v585_v15, 32 }
 0x117   : > { %v608_v28 = vsel %vm607_vm2, %v604_v23, %v606_v24  ;;  %v602_v29 = vsel %vm594_vm1, %v880_v31, 32  ;;  %vm618_vm3 = vcmp.lt.s32.totalorder %v596_v25, %v600_v27  ;;  %vm635_vm11 = vcmask 1040384  }
 0x118   : > { %v609_v30 = vrot.slane %v608_v28, 4  ;;  %v619_v32 = vsel %vm618_vm3, %v596_v25, %v600_v27  ;;  %vm620_vm4 = vcmp.lt.s32.totalorder %v598_v26, %v602_v29 }
 0x119   : > { %v621_v33 = vsel %vm620_vm4, %v598_v26, %v602_v29 }
 0x11a   : > { %vm610_vm5 = vcmp.lt.s32.totalorder %v608_v28, %v609_v30  ;;  %vm622_vm6 = vcmp.lt.s32.totalorder %v619_v32, %v621_v33 }
 0x11b   : > { %v611_v34 = vsel %vm610_vm5, %v608_v28, %v609_v30  ;;  %v623_v35 = vsel %vm622_vm6, %v619_v32, %v621_v33 }
 0x11c   : > { %v612_v36 = vrot.slane %v611_v34, 2  ;;  %v624_v37 = vrot.slane %v623_v35, 4 }
 0x11e   : > { %vm613_vm7 = vcmp.lt.s32.totalorder %v611_v34, %v612_v36  ;;  %vm625_vm8 = vcmp.lt.s32.totalorder %v623_v35, %v624_v37 }
 0x11f   : > { %v614_v4 = vsel %vm613_vm7, %v611_v34, %v612_v36  ;;  %v626_v38 = vsel %vm625_vm8, %v623_v35, %v624_v37 }
 0x120   : > { %v615_v39 = vrot.slane %v614_v4, 1  ;;  %v627_v40 = vrot.slane %v626_v38, 2 }
 0x122   : > { %vm616_vm9 = vcmp.lt.s32.totalorder %v614_v4, %v615_v39  ;;  %vm628_vm10 = vcmp.lt.s32.totalorder %v626_v38, %v627_v40 }
 0x123   : > { %v617_v31 = vsel %vm616_vm9, %v614_v4, %v615_v39  ;;  %v629_v41 = vsel %vm628_vm10, %v626_v38, %v627_v40 }
 0x124   : > { %v633_v42 = vmul.u32 %v617_v31, %v617_v31  ;;  %v630_v43 = vrot.slane %v629_v41, 1 }
 0x126   : > { %vm631_vm12 = vcmp.lt.s32.totalorder %v629_v41, %v630_v43  ;;  %v636_v45 = vsel %vm635_vm11, %v617_v31, %v633_v42 }
 0x127   : > { %v632_v44 = vsel %vm631_vm12, %v629_v41, %v630_v43 }
 0x128   : > { %v634_v46 = vmul.u32 %v632_v44, %v632_v44 }
 0x12a   : > { %v637_v47 = vsel %vm635_vm11, %v632_v44, %v634_v46 }
 0x12b   : > { %v638_v48 = vcombine.low %v636_v45, %v637_v47 }
 0x12d   : > { %765 = vst.sshfl [vmem:[%s186_s11] sm:$0x33 pattern:$0x76325410] %v638_v48 }
 0x12e PF: > { %s17_s17 = sadd.s32 1, %s807_s17  }
 0x12f   : > { %p14_p4 = scmp.ge.s32.totalorder %s17_s17, 4  }
 0x131   :  { %16 = sbr.rel (!%p14_p4) target bundleno = 2 (0x2), region = 98 }

</bundles_post_ra>
